<compile_context>
chip_gen: v7x
topology: tpu7x:2x2x1
jax: 0.10.0
libtpu: 0.0.40
codegen_flags: <defaults>
</compile_context>

<pallas_src>
import jax
import jax.numpy as jnp
from jax.experimental import pallas as pl
from jax.experimental.pallas import tpu as pltpu


def lstm_kernel(x_ref, wih_ref, whh_ref, b_ref, wout_ref, bout_ref, out_ref):
    """Full LSTM recurrence + final linear layer in one kernel.

    x_ref    : (T*Bp, I)     time-major, timestep-major blocks of Bp rows (Bp % 8 == 0)
    wih_ref  : (I, 4H)       weight_ih.T, gate order (i, f, o, g)
    whh_ref  : (H, 4H)       weight_hh.T, gate order (i, f, o, g)
    b_ref    : (1, 4H)       bias_ih + bias_hh, gate order (i, f, o, g)
    wout_ref : (H, 128)      linear.weight.T zero-padded to 128 lanes
    bout_ref : (1, 128)      linear.bias zero-padded to 128 lanes
    out_ref  : (Bp, 128)     lane-dense output (caller slices [:B, :O])
    """
    Bp = out_ref.shape[0]
    H = whh_ref.shape[0]
    T = x_ref.shape[0] // Bp

    # (1) One-shot input projection for all timesteps, bias folded in, kept in
    #     vregs (no VMEM scratch round-trip).
    gx = (jnp.dot(x_ref[...], wih_ref[...],
                  preferred_element_type=jnp.float32)
          + b_ref[...])                                           # (T*Bp, 4H)

    whh = whh_ref[...]                                            # loaded once
    h = jnp.zeros((Bp, H), jnp.float32)
    c = jnp.zeros((Bp, H), jnp.float32)

    def sigmoid1(z):
        # Single EUP op (tanh) instead of exp + dependent reciprocal.
        return 0.5 * (jnp.tanh(0.5 * z) + 1.0)

    # (4) Fully unrolled recurrence; t is a Python int so every slice is static.
    for t in range(T):
        # Only the recurrent matmul is on the serial critical path.
        z = gx[t * Bp:(t + 1) * Bp, :] + jnp.dot(
            h, whh, preferred_element_type=jnp.float32)           # (Bp, 4H)
        # Gate order (i, f, o, g): one sigmoid over lanes [0, 3H), one tanh.
        sig = sigmoid1(z[:, 0:3 * H])
        g_g = jnp.tanh(z[:, 3 * H:4 * H])
        i_g = sig[:, 0:H]
        f_g = sig[:, H:2 * H]
        o_g = sig[:, 2 * H:3 * H]
        c = f_g * c + i_g * g_g
        h = o_g * jnp.tanh(c)

    # (6) Lane-dense final linear: (Bp, H) @ (H, 128) + (1, 128), unmasked vst.
    out_ref[...] = (jnp.dot(h, wout_ref[...],
                            preferred_element_type=jnp.float32)
                    + bout_ref[...]).astype(out_ref.dtype)


def init_params(key, input_size, hidden_size, output_size):
    """Deterministic uniform(-k, k) init (mirrors torch's default LSTM/Linear init)."""
    k_lstm = 1.0 / jnp.sqrt(hidden_size)
    k_lin = 1.0 / jnp.sqrt(hidden_size)
    ks = jax.random.split(key, 6)
    return {
        "w_ih": jax.random.uniform(ks[0], (4 * hidden_size, input_size),
                                   jnp.float32, -k_lstm, k_lstm),
        "w_hh": jax.random.uniform(ks[1], (4 * hidden_size, hidden_size),
                                   jnp.float32, -k_lstm, k_lstm),
        "b_ih": jax.random.uniform(ks[2], (4 * hidden_size,),
                                   jnp.float32, -k_lstm, k_lstm),
        "b_hh": jax.random.uniform(ks[3], (4 * hidden_size,),
                                   jnp.float32, -k_lstm, k_lstm),
        "w_out": jax.random.uniform(ks[4], (output_size, hidden_size),
                                    jnp.float32, -k_lin, k_lin),
        "b_out": jax.random.uniform(ks[5], (output_size,),
                                    jnp.float32, -k_lin, k_lin),
    }


def prepare_params(params):
    """One-time weight preprocessing (gate permutation, transposes, padding).

    Done once and cached alongside the params so repeated forward calls do not
    redo the gather/transpose/pad HBM ops every time.
    """
    H = params["w_hh"].shape[1]
    O = params["w_out"].shape[0]
    # Reorder gate rows from PyTorch's (i, f, g, o) to (i, f, o, g) so the
    # kernel applies one contiguous sigmoid over [0, 3H) and one tanh over [3H, 4H).
    perm = jnp.concatenate([jnp.arange(0, 2 * H),
                            jnp.arange(3 * H, 4 * H),
                            jnp.arange(2 * H, 3 * H)])
    O_PAD = 128
    return {
        "wih_t": params["w_ih"][perm, :].T,                              # (I, 4H)
        "whh_t": params["w_hh"][perm, :].T,                              # (H, 4H)
        "bias": (params["b_ih"] + params["b_hh"])[perm][None],           # (1, 4H)
        "wout_t": jnp.zeros((H, O_PAD), jnp.float32).at[:, :O].set(params["w_out"].T),
        "bout": jnp.zeros((1, O_PAD), jnp.float32).at[:, :O].set(params["b_out"][None]),
        "H": H,
        "O": O,
    }


def lstm_forward(x, prep, is_glove=False):
    # Glue (slicing / transposes / batch padding) in plain JAX.
    if not is_glove:
        x = x[:, 1:, :]                     # drop first timestep, as in torch module
    B, T, I = x.shape
    H, O = prep["H"], prep["O"]

    # (2) Pad the batch/sublane axis to a multiple of 8 (zero rows) so every
    #     per-step row offset t*Bp is 8-aligned and the output store is unmasked.
    Bp = max(8, -(-B // 8) * 8)
    x_pad = jnp.zeros((Bp, T, I), x.dtype).at[:B].set(x)

    # Time-major, flattened: row t*Bp + b = x_pad[b, t, :], so the kernel runs one
    # big (T*Bp, I) @ (I, 4H) projection and takes Bp consecutive rows per step.
    x_flat = jnp.transpose(x_pad, (1, 0, 2)).reshape(T * Bp, I)

    vmem = pl.BlockSpec(memory_space=pltpu.MemorySpace.VMEM)
    out_padded = pl.pallas_call(
        lstm_kernel,
        out_shape=jax.ShapeDtypeStruct((Bp, 128), jnp.float32),
        in_specs=[vmem] * 6,
        out_specs=vmem,
    )(x_flat, prep["wih_t"], prep["whh_t"], prep["bias"],
      prep["wout_t"], prep["bout"])
    # Note: at large T/B (esp. v7x, 32 MiB scoped VMEM), switch to a T-chunk
    # grid ("arbitrary") with h/c carried in VMEM scratch and per-chunk input
    # projection so x-chunk DMA pipelines behind the recurrence.
    return out_padded[:B, :O]


if __name__ == "__main__":
    # Small shapes consistent with the module's forward:
    # batch=2, seq=8 (7 after x[:, 1:, :]), input_size=16, hidden=32, output=11.
    B, T, INPUT, HIDDEN, OUT = 2, 8, 16, 32, 11

    key = jax.random.PRNGKey(0)
    k_x, k_p = jax.random.split(key)
    x = jax.random.normal(k_x, (B, T, INPUT), jnp.float32)
    params = init_params(k_p, INPUT, HIDDEN, OUT)
    prep = prepare_params(params)          # one-time weight preprocessing

    out = lstm_forward(x, prep, is_glove=False)
    out = jax.block_until_ready(out)
    assert out.shape == (B, OUT), out.shape

    # Pure-JAX reference of the same math (original torch gate order), no files.
    def ref_forward(x, p):
        xs = x[:, 1:, :]
        H = HIDDEN
        h = jnp.zeros((B, H), jnp.float32)
        c = jnp.zeros((B, H), jnp.float32)
        for t in range(xs.shape[1]):
            z = xs[:, t, :] @ p["w_ih"].T + h @ p["w_hh"].T + p["b_ih"] + p["b_hh"]
            i = jax.nn.sigmoid(z[:, :H]); f = jax.nn.sigmoid(z[:, H:2 * H])
            g = jnp.tanh(z[:, 2 * H:3 * H]); o = jax.nn.sigmoid(z[:, 3 * H:])
            c = f * c + i * g
            h = o * jnp.tanh(c)
        return h @ p["w_out"].T + p["b_out"]

    ref = ref_forward(x, params)
    assert jnp.allclose(out, ref, atol=1e-5, rtol=1e-5), float(jnp.max(jnp.abs(out - ref)))

    print("KERNEL_OK")
</pallas_src>

<mosaic_0001>
module attributes {stable_mosaic.version = 11 : i64} {
  func.func @lstm_kernel(%arg0: memref<56x16xf32, #tpu.memory_space<vmem>>, %arg1: memref<16x128xf32, #tpu.memory_space<vmem>>, %arg2: memref<32x128xf32, #tpu.memory_space<vmem>>, %arg3: memref<1x128xf32, #tpu.memory_space<vmem>>, %arg4: memref<32x128xf32, #tpu.memory_space<vmem>>, %arg5: memref<1x128xf32, #tpu.memory_space<vmem>>, %arg6: memref<8x128xf32, #tpu.memory_space<vmem>>) attributes {dimension_semantics = [], scalar_prefetch = 0 : i64, scratch_operands = 0 : i64, tpu.core_type = #tpu.core_type<tc>} {
    %c0 = arith.constant 0 : index
    %c0_0 = arith.constant 0 : index
    %0 = vector.load %arg0[%c0, %c0_0] : memref<56x16xf32, #tpu.memory_space<vmem>>, vector<56x16xf32>
    %c0_1 = arith.constant 0 : index
    %c0_2 = arith.constant 0 : index
    %1 = vector.load %arg1[%c0_1, %c0_2] : memref<16x128xf32, #tpu.memory_space<vmem>>, vector<16x128xf32>
    %cst = arith.constant dense<0.000000e+00> : vector<56x128xf32>
    %2 = tpu.matmul %0, %1, %cst {dimension_numbers = #tpu.dot_dimension_numbers<[1], [0], [0], [1], [0, 0, 1, 1], [], []>} : vector<56x16xf32>, vector<16x128xf32>, vector<56x128xf32> -> vector<56x128xf32>
    %c0_3 = arith.constant 0 : index
    %c0_4 = arith.constant 0 : index
    %3 = vector.load %arg3[%c0_3, %c0_4] : memref<1x128xf32, #tpu.memory_space<vmem>>, vector<1x128xf32>
    %4 = vector.broadcast %3 : vector<1x128xf32> to vector<56x128xf32>
    %5 = arith.addf %2, %4 : vector<56x128xf32>
    %c0_5 = arith.constant 0 : index
    %c0_6 = arith.constant 0 : index
    %6 = vector.load %arg2[%c0_5, %c0_6] : memref<32x128xf32, #tpu.memory_space<vmem>>, vector<32x128xf32>
    %cst_7 = arith.constant 0.000000e+00 : f32
    %7 = vector.broadcast %cst_7 : f32 to vector<8x32xf32>
    %cst_8 = arith.constant 0.000000e+00 : f32
    %8 = vector.broadcast %cst_8 : f32 to vector<8x32xf32>
    %9 = vector.extract_strided_slice %5 {offsets = [0, 0], sizes = [8, 128], strides = [1, 1]} : vector<56x128xf32> to vector<8x128xf32>
    %cst_9 = arith.constant dense<0.000000e+00> : vector<8x128xf32>
    %10 = tpu.matmul %7, %6, %cst_9 {dimension_numbers = #tpu.dot_dimension_numbers<[1], [0], [0], [1], [0, 0, 1, 1], [], []>} : vector<8x32xf32>, vector<32x128xf32>, vector<8x128xf32> -> vector<8x128xf32>
    %11 = arith.addf %9, %10 : vector<8x128xf32>
    %12 = vector.extract_strided_slice %11 {offsets = [0, 0], sizes = [8, 96], strides = [1, 1]} : vector<8x128xf32> to vector<8x96xf32>
    %cst_10 = arith.constant 5.000000e-01 : f32
    %13 = vector.broadcast %cst_10 : f32 to vector<8x96xf32>
    %14 = arith.mulf %13, %12 : vector<8x96xf32>
    %15 = math.tanh %14 : vector<8x96xf32>
    %cst_11 = arith.constant 1.000000e+00 : f32
    %16 = vector.broadcast %cst_11 : f32 to vector<8x96xf32>
    %17 = arith.addf %15, %16 : vector<8x96xf32>
    %cst_12 = arith.constant 5.000000e-01 : f32
    %18 = vector.broadcast %cst_12 : f32 to vector<8x96xf32>
    %19 = arith.mulf %18, %17 : vector<8x96xf32>
    %20 = vector.extract_strided_slice %11 {offsets = [0, 96], sizes = [8, 32], strides = [1, 1]} : vector<8x128xf32> to vector<8x32xf32>
    %21 = math.tanh %20 : vector<8x32xf32>
    %22 = vector.extract_strided_slice %19 {offsets = [0, 0], sizes = [8, 32], strides = [1, 1]} : vector<8x96xf32> to vector<8x32xf32>
    %23 = vector.extract_strided_slice %19 {offsets = [0, 32], sizes = [8, 32], strides = [1, 1]} : vector<8x96xf32> to vector<8x32xf32>
    %24 = vector.extract_strided_slice %19 {offsets = [0, 64], sizes = [8, 32], strides = [1, 1]} : vector<8x96xf32> to vector<8x32xf32>
    %25 = arith.mulf %23, %8 : vector<8x32xf32>
    %26 = arith.mulf %22, %21 : vector<8x32xf32>
    %27 = arith.addf %25, %26 : vector<8x32xf32>
    %28 = math.tanh %27 : vector<8x32xf32>
    %29 = arith.mulf %24, %28 : vector<8x32xf32>
    %30 = vector.extract_strided_slice %5 {offsets = [8, 0], sizes = [8, 128], strides = [1, 1]} : vector<56x128xf32> to vector<8x128xf32>
    %cst_13 = arith.constant dense<0.000000e+00> : vector<8x128xf32>
    %31 = tpu.matmul %29, %6, %cst_13 {dimension_numbers = #tpu.dot_dimension_numbers<[1], [0], [0], [1], [0, 0, 1, 1], [], []>} : vector<8x32xf32>, vector<32x128xf32>, vector<8x128xf32> -> vector<8x128xf32>
    %32 = arith.addf %30, %31 : vector<8x128xf32>
    %33 = vector.extract_strided_slice %32 {offsets = [0, 0], sizes = [8, 96], strides = [1, 1]} : vector<8x128xf32> to vector<8x96xf32>
    %cst_14 = arith.constant 5.000000e-01 : f32
    %34 = vector.broadcast %cst_14 : f32 to vector<8x96xf32>
    %35 = arith.mulf %34, %33 : vector<8x96xf32>
    %36 = math.tanh %35 : vector<8x96xf32>
    %cst_15 = arith.constant 1.000000e+00 : f32
    %37 = vector.broadcast %cst_15 : f32 to vector<8x96xf32>
    %38 = arith.addf %36, %37 : vector<8x96xf32>
    %cst_16 = arith.constant 5.000000e-01 : f32
    %39 = vector.broadcast %cst_16 : f32 to vector<8x96xf32>
    %40 = arith.mulf %39, %38 : vector<8x96xf32>
    %41 = vector.extract_strided_slice %32 {offsets = [0, 96], sizes = [8, 32], strides = [1, 1]} : vector<8x128xf32> to vector<8x32xf32>
    %42 = math.tanh %41 : vector<8x32xf32>
    %43 = vector.extract_strided_slice %40 {offsets = [0, 0], sizes = [8, 32], strides = [1, 1]} : vector<8x96xf32> to vector<8x32xf32>
    %44 = vector.extract_strided_slice %40 {offsets = [0, 32], sizes = [8, 32], strides = [1, 1]} : vector<8x96xf32> to vector<8x32xf32>
    %45 = vector.extract_strided_slice %40 {offsets = [0, 64], sizes = [8, 32], strides = [1, 1]} : vector<8x96xf32> to vector<8x32xf32>
    %46 = arith.mulf %44, %27 : vector<8x32xf32>
    %47 = arith.mulf %43, %42 : vector<8x32xf32>
    %48 = arith.addf %46, %47 : vector<8x32xf32>
    %49 = math.tanh %48 : vector<8x32xf32>
    %50 = arith.mulf %45, %49 : vector<8x32xf32>
    %51 = vector.extract_strided_slice %5 {offsets = [16, 0], sizes = [8, 128], strides = [1, 1]} : vector<56x128xf32> to vector<8x128xf32>
    %cst_17 = arith.constant dense<0.000000e+00> : vector<8x128xf32>
    %52 = tpu.matmul %50, %6, %cst_17 {dimension_numbers = #tpu.dot_dimension_numbers<[1], [0], [0], [1], [0, 0, 1, 1], [], []>} : vector<8x32xf32>, vector<32x128xf32>, vector<8x128xf32> -> vector<8x128xf32>
    %53 = arith.addf %51, %52 : vector<8x128xf32>
    %54 = vector.extract_strided_slice %53 {offsets = [0, 0], sizes = [8, 96], strides = [1, 1]} : vector<8x128xf32> to vector<8x96xf32>
    %cst_18 = arith.constant 5.000000e-01 : f32
    %55 = vector.broadcast %cst_18 : f32 to vector<8x96xf32>
    %56 = arith.mulf %55, %54 : vector<8x96xf32>
    %57 = math.tanh %56 : vector<8x96xf32>
    %cst_19 = arith.constant 1.000000e+00 : f32
    %58 = vector.broadcast %cst_19 : f32 to vector<8x96xf32>
    %59 = arith.addf %57, %58 : vector<8x96xf32>
    %cst_20 = arith.constant 5.000000e-01 : f32
    %60 = vector.broadcast %cst_20 : f32 to vector<8x96xf32>
    %61 = arith.mulf %60, %59 : vector<8x96xf32>
    %62 = vector.extract_strided_slice %53 {offsets = [0, 96], sizes = [8, 32], strides = [1, 1]} : vector<8x128xf32> to vector<8x32xf32>
    %63 = math.tanh %62 : vector<8x32xf32>
    %64 = vector.extract_strided_slice %61 {offsets = [0, 0], sizes = [8, 32], strides = [1, 1]} : vector<8x96xf32> to vector<8x32xf32>
    %65 = vector.extract_strided_slice %61 {offsets = [0, 32], sizes = [8, 32], strides = [1, 1]} : vector<8x96xf32> to vector<8x32xf32>
    %66 = vector.extract_strided_slice %61 {offsets = [0, 64], sizes = [8, 32], strides = [1, 1]} : vector<8x96xf32> to vector<8x32xf32>
    %67 = arith.mulf %65, %48 : vector<8x32xf32>
    %68 = arith.mulf %64, %63 : vector<8x32xf32>
    %69 = arith.addf %67, %68 : vector<8x32xf32>
    %70 = math.tanh %69 : vector<8x32xf32>
    %71 = arith.mulf %66, %70 : vector<8x32xf32>
    %72 = vector.extract_strided_slice %5 {offsets = [24, 0], sizes = [8, 128], strides = [1, 1]} : vector<56x128xf32> to vector<8x128xf32>
    %cst_21 = arith.constant dense<0.000000e+00> : vector<8x128xf32>
    %73 = tpu.matmul %71, %6, %cst_21 {dimension_numbers = #tpu.dot_dimension_numbers<[1], [0], [0], [1], [0, 0, 1, 1], [], []>} : vector<8x32xf32>, vector<32x128xf32>, vector<8x128xf32> -> vector<8x128xf32>
    %74 = arith.addf %72, %73 : vector<8x128xf32>
    %75 = vector.extract_strided_slice %74 {offsets = [0, 0], sizes = [8, 96], strides = [1, 1]} : vector<8x128xf32> to vector<8x96xf32>
    %cst_22 = arith.constant 5.000000e-01 : f32
    %76 = vector.broadcast %cst_22 : f32 to vector<8x96xf32>
    %77 = arith.mulf %76, %75 : vector<8x96xf32>
    %78 = math.tanh %77 : vector<8x96xf32>
    %cst_23 = arith.constant 1.000000e+00 : f32
    %79 = vector.broadcast %cst_23 : f32 to vector<8x96xf32>
    %80 = arith.addf %78, %79 : vector<8x96xf32>
    %cst_24 = arith.constant 5.000000e-01 : f32
    %81 = vector.broadcast %cst_24 : f32 to vector<8x96xf32>
    %82 = arith.mulf %81, %80 : vector<8x96xf32>
    %83 = vector.extract_strided_slice %74 {offsets = [0, 96], sizes = [8, 32], strides = [1, 1]} : vector<8x128xf32> to vector<8x32xf32>
    %84 = math.tanh %83 : vector<8x32xf32>
    %85 = vector.extract_strided_slice %82 {offsets = [0, 0], sizes = [8, 32], strides = [1, 1]} : vector<8x96xf32> to vector<8x32xf32>
    %86 = vector.extract_strided_slice %82 {offsets = [0, 32], sizes = [8, 32], strides = [1, 1]} : vector<8x96xf32> to vector<8x32xf32>
    %87 = vector.extract_strided_slice %82 {offsets = [0, 64], sizes = [8, 32], strides = [1, 1]} : vector<8x96xf32> to vector<8x32xf32>
    %88 = arith.mulf %86, %69 : vector<8x32xf32>
    %89 = arith.mulf %85, %84 : vector<8x32xf32>
    %90 = arith.addf %88, %89 : vector<8x32xf32>
    %91 = math.tanh %90 : vector<8x32xf32>
    %92 = arith.mulf %87, %91 : vector<8x32xf32>
    %93 = vector.extract_strided_slice %5 {offsets = [32, 0], sizes = [8, 128], strides = [1, 1]} : vector<56x128xf32> to vector<8x128xf32>
    %cst_25 = arith.constant dense<0.000000e+00> : vector<8x128xf32>
    %94 = tpu.matmul %92, %6, %cst_25 {dimension_numbers = #tpu.dot_dimension_numbers<[1], [0], [0], [1], [0, 0, 1, 1], [], []>} : vector<8x32xf32>, vector<32x128xf32>, vector<8x128xf32> -> vector<8x128xf32>
    %95 = arith.addf %93, %94 : vector<8x128xf32>
    %96 = vector.extract_strided_slice %95 {offsets = [0, 0], sizes = [8, 96], strides = [1, 1]} : vector<8x128xf32> to vector<8x96xf32>
    %cst_26 = arith.constant 5.000000e-01 : f32
    %97 = vector.broadcast %cst_26 : f32 to vector<8x96xf32>
    %98 = arith.mulf %97, %96 : vector<8x96xf32>
    %99 = math.tanh %98 : vector<8x96xf32>
    %cst_27 = arith.constant 1.000000e+00 : f32
    %100 = vector.broadcast %cst_27 : f32 to vector<8x96xf32>
    %101 = arith.addf %99, %100 : vector<8x96xf32>
    %cst_28 = arith.constant 5.000000e-01 : f32
    %102 = vector.broadcast %cst_28 : f32 to vector<8x96xf32>
    %103 = arith.mulf %102, %101 : vector<8x96xf32>
    %104 = vector.extract_strided_slice %95 {offsets = [0, 96], sizes = [8, 32], strides = [1, 1]} : vector<8x128xf32> to vector<8x32xf32>
    %105 = math.tanh %104 : vector<8x32xf32>
    %106 = vector.extract_strided_slice %103 {offsets = [0, 0], sizes = [8, 32], strides = [1, 1]} : vector<8x96xf32> to vector<8x32xf32>
    %107 = vector.extract_strided_slice %103 {offsets = [0, 32], sizes = [8, 32], strides = [1, 1]} : vector<8x96xf32> to vector<8x32xf32>
    %108 = vector.extract_strided_slice %103 {offsets = [0, 64], sizes = [8, 32], strides = [1, 1]} : vector<8x96xf32> to vector<8x32xf32>
    %109 = arith.mulf %107, %90 : vector<8x32xf32>
    %110 = arith.mulf %106, %105 : vector<8x32xf32>
    %111 = arith.addf %109, %110 : vector<8x32xf32>
    %112 = math.tanh %111 : vector<8x32xf32>
    %113 = arith.mulf %108, %112 : vector<8x32xf32>
    %114 = vector.extract_strided_slice %5 {offsets = [40, 0], sizes = [8, 128], strides = [1, 1]} : vector<56x128xf32> to vector<8x128xf32>
    %cst_29 = arith.constant dense<0.000000e+00> : vector<8x128xf32>
    %115 = tpu.matmul %113, %6, %cst_29 {dimension_numbers = #tpu.dot_dimension_numbers<[1], [0], [0], [1], [0, 0, 1, 1], [], []>} : vector<8x32xf32>, vector<32x128xf32>, vector<8x128xf32> -> vector<8x128xf32>
    %116 = arith.addf %114, %115 : vector<8x128xf32>
    %117 = vector.extract_strided_slice %116 {offsets = [0, 0], sizes = [8, 96], strides = [1, 1]} : vector<8x128xf32> to vector<8x96xf32>
    %cst_30 = arith.constant 5.000000e-01 : f32
    %118 = vector.broadcast %cst_30 : f32 to vector<8x96xf32>
    %119 = arith.mulf %118, %117 : vector<8x96xf32>
    %120 = math.tanh %119 : vector<8x96xf32>
    %cst_31 = arith.constant 1.000000e+00 : f32
    %121 = vector.broadcast %cst_31 : f32 to vector<8x96xf32>
    %122 = arith.addf %120, %121 : vector<8x96xf32>
    %cst_32 = arith.constant 5.000000e-01 : f32
    %123 = vector.broadcast %cst_32 : f32 to vector<8x96xf32>
    %124 = arith.mulf %123, %122 : vector<8x96xf32>
    %125 = vector.extract_strided_slice %116 {offsets = [0, 96], sizes = [8, 32], strides = [1, 1]} : vector<8x128xf32> to vector<8x32xf32>
    %126 = math.tanh %125 : vector<8x32xf32>
    %127 = vector.extract_strided_slice %124 {offsets = [0, 0], sizes = [8, 32], strides = [1, 1]} : vector<8x96xf32> to vector<8x32xf32>
    %128 = vector.extract_strided_slice %124 {offsets = [0, 32], sizes = [8, 32], strides = [1, 1]} : vector<8x96xf32> to vector<8x32xf32>
    %129 = vector.extract_strided_slice %124 {offsets = [0, 64], sizes = [8, 32], strides = [1, 1]} : vector<8x96xf32> to vector<8x32xf32>
    %130 = arith.mulf %128, %111 : vector<8x32xf32>
    %131 = arith.mulf %127, %126 : vector<8x32xf32>
    %132 = arith.addf %130, %131 : vector<8x32xf32>
    %133 = math.tanh %132 : vector<8x32xf32>
    %134 = arith.mulf %129, %133 : vector<8x32xf32>
    %135 = vector.extract_strided_slice %5 {offsets = [48, 0], sizes = [8, 128], strides = [1, 1]} : vector<56x128xf32> to vector<8x128xf32>
    %cst_33 = arith.constant dense<0.000000e+00> : vector<8x128xf32>
    %136 = tpu.matmul %134, %6, %cst_33 {dimension_numbers = #tpu.dot_dimension_numbers<[1], [0], [0], [1], [0, 0, 1, 1], [], []>} : vector<8x32xf32>, vector<32x128xf32>, vector<8x128xf32> -> vector<8x128xf32>
    %137 = arith.addf %135, %136 : vector<8x128xf32>
    %138 = vector.extract_strided_slice %137 {offsets = [0, 0], sizes = [8, 96], strides = [1, 1]} : vector<8x128xf32> to vector<8x96xf32>
    %cst_34 = arith.constant 5.000000e-01 : f32
    %139 = vector.broadcast %cst_34 : f32 to vector<8x96xf32>
    %140 = arith.mulf %139, %138 : vector<8x96xf32>
    %141 = math.tanh %140 : vector<8x96xf32>
    %cst_35 = arith.constant 1.000000e+00 : f32
    %142 = vector.broadcast %cst_35 : f32 to vector<8x96xf32>
    %143 = arith.addf %141, %142 : vector<8x96xf32>
    %cst_36 = arith.constant 5.000000e-01 : f32
    %144 = vector.broadcast %cst_36 : f32 to vector<8x96xf32>
    %145 = arith.mulf %144, %143 : vector<8x96xf32>
    %146 = vector.extract_strided_slice %137 {offsets = [0, 96], sizes = [8, 32], strides = [1, 1]} : vector<8x128xf32> to vector<8x32xf32>
    %147 = math.tanh %146 : vector<8x32xf32>
    %148 = vector.extract_strided_slice %145 {offsets = [0, 0], sizes = [8, 32], strides = [1, 1]} : vector<8x96xf32> to vector<8x32xf32>
    %149 = vector.extract_strided_slice %145 {offsets = [0, 32], sizes = [8, 32], strides = [1, 1]} : vector<8x96xf32> to vector<8x32xf32>
    %150 = vector.extract_strided_slice %145 {offsets = [0, 64], sizes = [8, 32], strides = [1, 1]} : vector<8x96xf32> to vector<8x32xf32>
    %151 = arith.mulf %149, %132 : vector<8x32xf32>
    %152 = arith.mulf %148, %147 : vector<8x32xf32>
    %153 = arith.addf %151, %152 : vector<8x32xf32>
    %154 = math.tanh %153 : vector<8x32xf32>
    %155 = arith.mulf %150, %154 : vector<8x32xf32>
    %c0_37 = arith.constant 0 : index
    %c0_38 = arith.constant 0 : index
    %156 = vector.load %arg4[%c0_37, %c0_38] : memref<32x128xf32, #tpu.memory_space<vmem>>, vector<32x128xf32>
    %cst_39 = arith.constant dense<0.000000e+00> : vector<8x128xf32>
    %157 = tpu.matmul %155, %156, %cst_39 {dimension_numbers = #tpu.dot_dimension_numbers<[1], [0], [0], [1], [0, 0, 1, 1], [], []>} : vector<8x32xf32>, vector<32x128xf32>, vector<8x128xf32> -> vector<8x128xf32>
    %c0_40 = arith.constant 0 : index
    %c0_41 = arith.constant 0 : index
    %158 = vector.load %arg5[%c0_40, %c0_41] : memref<1x128xf32, #tpu.memory_space<vmem>>, vector<1x128xf32>
    %159 = vector.broadcast %158 : vector<1x128xf32> to vector<8x128xf32>
    %160 = arith.addf %157, %159 : vector<8x128xf32>
    %c0_42 = arith.constant 0 : index
    %c0_43 = arith.constant 0 : index
    %161 = vector.load %arg6[%c0_42, %c0_43] : memref<8x128xf32, #tpu.memory_space<vmem>>, vector<8x128xf32>
    tpu.vector_store %arg6[%c0_42, %c0_43], %160 {strides = array<i32>} : memref<8x128xf32, #tpu.memory_space<vmem>>, vector<8x128xf32>,
    return
  }
}

</mosaic_0001>

<bundles_post_ra>
// kernel: tpu_custom_call.1
= control target key start
LH: loop header
LB: loop body
LE: loop exit
PB: predicated region body
PF: predicated region fallthrough
CT: control target
= control target key end

     0   :  { %11 = vsyncpa [#allocation3], 0  ;;  %s1552_s0 = inlined_call_operand.vmem [shape: f32[56,16], index: 0, kind: input, shape index: {}]   ;;  %s1553_s1 = inlined_call_operand.hbm [shape: f32[16,128], index: 1, kind: input, shape index: {}]   ;;  %s1554_s2 = inlined_call_operand.vmem [shape: f32[32,128], index: 2, kind: input, shape index: {}]   ;;  %s1555_s3 = inlined_call_operand.vmem [shape: f32[1,128], index: 3, kind: input, shape index: {}]   ;;  %s1556_s4 = inlined_call_operand.vmem [shape: f32[32,128], index: 4, kind: input, shape index: {}]   ;;  %s1557_s5 = inlined_call_operand.vmem [shape: f32[1,128], index: 5, kind: input, shape index: {}]   ;;  %s1558_s6 = inlined_call_operand.hbm [shape: f32[8,128], index: 6, kind: output, shape index: {}]  }
   0x1   :  { %12 = vsyncpa [#allocation4], 0  ;;  %s1310_s21 = smov [#allocation2]   ;;  %s1262_s25 = scalar_lea.hbm %s1553_s1, 256 }
   0x2   :  { %s20_s22 = sshll.u32 %s1310_s21, 4  ;;  %p1263_p0 = scmp.ne.s32.totalorder %s1553_s1, %s1262_s25  ;;  %s21_s22 = int_to_ptr.vmem [resolvable:$true] %s20_s22 }
   0x3   :  { %p1266_p1 = scmp.lt.u32.totalorder %s1262_s25, %s1553_s1 }
   0x5   :  { %p1268_p2 = pnand %p1266_p1, %p1263_p0 }
   0x7   :  { %1271 = shalt.err (!%p1268_p2)
}
   0x8   :  { %s1272_s30 = scalar_lea.vmem %s21_s22, 256  ;;  %p1277_p4 = scmp.lt.s32.totalorder %s21_s22, %s21_s22 }
   0x9   :  { %p1273_p3 = scmp.ne.s32.totalorder %s21_s22, %s1272_s30  ;;  %p1278_p5 = scmp.lt.s32.totalorder %s1272_s30, %s1272_s30 }
   0xb   :  { %p1279_p6 = por %p1278_p5, %p1277_p4 }
   0xd   :  { %p1280_p7 = pnand %p1279_p6, %p1273_p3 }
   0xf   :  { %1283 = shalt.err (!%p1280_p7)
}
  0x10   :  { %s1311_s7 = smov 128   ;;  %s1312_s8 = smov 8  }
  0x11   :  { %26 = dma.hbm_to_vmem [thread:$0]  %s1553_s1, 256, %s21_s22, [#allocation3], %s1311_s7, %s1311_s7, %s1312_s8  }
  0x12   :  { %1306 = dma.done.wait [#allocation3], 256  }
  0x13   :  { %1307 = vsyncadd [#allocation3], 4294967040  ;;  %v1313_v0 = vmov 0.0|0.0   ;;  %vm1314_vm0 = vmmov 0   ;;  %v1315_v1 = vmov 0.0   ;;  %v45_v2 = vld [vmem:[#allocation2] sm:$0xff] }
  0x14   :  { %1145 = vmatprep.subr.bf16.mxu1 %v1313_v0  ;;  %1036 = vmatprep.mubr.msk.f32.mxu1 %vm1314_vm0, %v1315_v1  ;;  %v46_v3 = vld [vmem:[#allocation2 + $0x8] sm:$0xff]  ;;  %v176_v5 = vld [vmem:[%s1554_s2] sm:$0xff]  ;;  %vm54_vm1 = vcmask 130048   ;;  %v178_v9 = vld [vmem:[%s1554_s2 + $0x10] sm:$0xff]  ;;  %vm180_vm2 = vcmask 261120  }
  0x15   :  { %1154 = vmatprep.subr.bf16.mxu0 %v1313_v0  ;;  %1076 = vmatprep.mubr.msk.f32.mxu0 %vm1314_vm0, %v1315_v1  ;;  %v1146_v4 = vpack.c.bf16 %v46_v3, %v45_v2  ;;  %v177_v6 = vld [vmem:[%s1554_s2 + $0x8] sm:$0xff]  ;;  %v38_v8 = vld [vmem:[%s1552_s0] sm:$0xff]  ;;  %v179_v10 = vld [vmem:[%s1554_s2 + $0x18] sm:$0xff] }
  0x16   :  { %v1378_v7 = vpack.c.bf16 %v177_v6, %v176_v5  ;;  %v1393_v11 = vpack.c.bf16 %v179_v10, %v178_v9  ;;  %v39_v12 = vld [vmem:[%s1552_s0 + $0x8] sm:$0xff]  ;;  %v40_v13 = vld [vmem:[%s1552_s0 + $0x10] sm:$0xff]  ;;  %v41_v14 = vld [vmem:[%s1552_s0 + $0x18] sm:$0xff] }
  0x17   :  { %1147 = vmatpush3.bf16.msra.mxu1 %v1146_v4  ;;  %v42_v15 = vld [vmem:[%s1552_s0 + $0x20] sm:$0xff]  ;;  %v43_v16 = vld [vmem:[%s1552_s0 + $0x28] sm:$0xff]  ;;  %v44_v17 = vld [vmem:[%s1552_s0 + $0x30] sm:$0xff]  ;;  %s1316_s0 = smov 32  }
  0x18   :  { %1148 = vmatprep.subr.bf16.mxu1 %v1313_v0  ;;  %1156 = vmatpush3.bf16.msra.mxu0 %v1378_v7  ;;  %v967_v18 = vld [vmem:[%s1555_s3] ss:$0 sm:$0xff]  ;;  %s1317_s3 = smov 64  }
  0x19   :  { %1157 = vmatprep.subr.bf16.mxu0 %v1313_v0 }
  0x1a   :  { %1037 = vmatmul.mubr.msk.f32.vlgmr.msra.gmra.mrb[0].mxu1 %vm54_vm1, %v38_v8 }
  0x1b   :  { %1150 = vmatpush3.bf16.msra.mxu1 %v1378_v7  ;;  %1039 = vmatprep.mubr.msk.f32.mxu1 %vm1314_vm0, %v1315_v1 }
  0x1c   :  { %1151 = vmatprep.subr.bf16.mxu1 %v1313_v0  ;;  %1159 = vmatpush3.bf16.msra.mxu0 %v1393_v11 }
  0x1d   :  { %1160 = vmatprep.subr.bf16.mxu0 %v1313_v0 }
  0x1e   :  { %1040 = vmatmul.mubr.msk.f32.gmra.mrb[2].mxu1 %vm54_vm1, %v39_v12 }
  0x1f   :  { %1042 = vmatprep.mubr.msk.f32.mxu1 %vm1314_vm0, %v1315_v1  ;;  %1153 = vmatpush3.bf16.msra.mxu1 %v1393_v11 }
  0x20   :  { %1190 = vmatprep.subr.bf16.mxu1 %v1313_v0 }
  0x22   :  { %1043 = vmatmul.mubr.msk.f32.gmra.mrb[4].mxu1 %vm54_vm1, %v40_v13 }
  0x23   :  { %1045 = vmatprep.mubr.msk.f32.mxu1 %vm1314_vm0, %v1315_v1 }
  0x26   :  { %1046 = vmatmul.mubr.msk.f32.gmra.mrb[6].mxu1 %vm54_vm1, %v41_v14 }
  0x27   :  { %1048 = vmatprep.mubr.msk.f32.mxu1 %vm1314_vm0, %v1315_v1 }
  0x2a   :  { %1049 = vmatmul.mubr.msk.f32.gmra.mrb[8].mxu1 %vm54_vm1, %v42_v15 }
  0x2b   :  { %1051 = vmatprep.mubr.msk.f32.mxu1 %vm1314_vm0, %v1315_v1 }
  0x2e   :  { %1052 = vmatmul.mubr.msk.f32.gmra.mrb[10].mxu1 %vm54_vm1, %v43_v16 }
  0x2f   :  { %1054 = vmatprep.mubr.msk.f32.mxu1 %vm1314_vm0, %v1315_v1 }
  0x32   :  { %1055 = vmatmul.mubr.msk.f32.gmra.mrb[12].mxu1 %vm54_vm1, %v44_v17 }
  0x33   :  { %1065 = vmatprep.mubr.msk.f32.mxu1 %vm1314_vm0, %v1315_v1 }
  0x36   :  { %1066 = vmatmul.mubr.f32.vlgmr.msra.gmra.mrb[0].mxu1 %v1315_v1 }
  0x37   :  { %1142 = vmatprep.mubr.msk.f32.mxu1 %vm1314_vm0, %v1315_v1 }
  0xf1   :  { %v147_v19 = vpop.f32.mrb[2].mxu1 }
  0xf2   :  { %v148_v20 = vadd.f32 %v967_v18, %v147_v19  ;;  %v1041_v21 = vpop.f32.mrb[3].mxu1 }
  0xf5   :  { %v152_v22 = vpop.f32.mrb[4].mxu1 }
  0xf6   :  { %v1445_v23 = vadd.f32 %v967_v18, %v152_v22  ;;  %v1044_v24 = vpop.f32.mrb[5].mxu1 }
  0xf9   :  { %v157_v25 = vpop.f32.mrb[6].mxu1 }
  0xfa   :  { %v1447_v26 = vadd.f32 %v967_v18, %v157_v25  ;;  %v1047_v27 = vpop.f32.mrb[7].mxu1 }
  0xfd   :  { %v162_v28 = vpop.f32.mrb[8].mxu1 }
  0xfe   :  { %v1449_v29 = vadd.f32 %v967_v18, %v162_v28  ;;  %v1050_v30 = vpop.f32.mrb[9].mxu1 }
 0x101   :  { %v167_v31 = vpop.f32.mrb[10].mxu1 }
 0x102   :  { %v1451_v32 = vadd.f32 %v967_v18, %v167_v31  ;;  %v1053_v33 = vpop.f32.mrb[11].mxu1 }
 0x105   :  { %v172_v34 = vpop.f32.mrb[12].mxu1 }
 0x106   :  { %v1453_v35 = vadd.f32 %v967_v18, %v172_v34  ;;  %v1056_v36 = vpop.f32.mrb[13].mxu1 }
 0x109   :  { %v250_v37 = vpop.f32.mrb[0].mxu1 }
 0x10a   :  { %v1196_v38 = vadd.f32 %v967_v18, %v250_v37  ;;  %v1067_v39 = vpop.f32.mrb[1].mxu1 }
 0x10c   :  { %1220 = vtanh.f32 %v1196_v38  ;;  %v255_v41 = vmul.f32 0.5, %v1196_v38 }
 0x10e   :  { %1222 = vtanh.f32 %v255_v41 }
 0x116   :  { %v1221_v40 = vpop.eup %1220 }
 0x117   :  { %262 = vrot.lane.b32.xlu0 %v1221_v40, %s1316_s0 }
 0x118   :  { %v1223_v42 = vpop.eup %1222 }
 0x119   :  { %v257_v43 = vadd.f32 1.0, %v1223_v42 }
 0x11b   :  { %v258_v44 = vmul.f32 0.5, %v257_v43 }
 0x11d   :  { %v260_v47 = vmul.f32 0.0, %v258_v44 }
 0x189   :  { %v263_v45 = vpop.permute.xlu0 %262 }
 0x18a   :  { %v265_v46 = vmul.f32 %v263_v45, %v258_v44 }
 0x18c   :  { %267 = vrot.lane.b32.xlu0 %v265_v46, %s1316_s0 }
 0x1fe   :  { %v268_v48 = vpop.permute.xlu0 %267 }
 0x1ff   :  { %v270_v49 = vadd.f32 %v268_v48, %v260_v47 }
 0x201   :  { %1224 = vtanh.f32 %v270_v49 }
 0x20b   :  { %v1225_v50 = vpop.eup %1224 }
 0x20c   :  { %273 = vrot.lane.b32.xlu1 %v1225_v50, %s1316_s0 }
 0x27e   :  { %v274_v51 = vpop.permute.xlu1 %273 }
 0x27f   :  { %v276_v52 = vmul.f32 %v274_v51, %v258_v44 }
 0x281   :  { %278 = vrot.lane.b32.xlu1 %v276_v52, %s1317_s3 }
 0x2f3   :  { %v279_v53 = vpop.permute.xlu1 %278 }
 0x2f4   :  { %1077 = vmatmul.mubr.msk.f32.vlgmr.msra.gmra.mrb[0].mxu0 %vm180_vm2, %v279_v53 }
 0x2f5   :  { %1162 = vmatpush3.bf16.msra.mxu0 %v1378_v7  ;;  %1087 = vmatprep.mubr.msk.f32.mxu0 %vm1314_vm0, %v1315_v1 }
 0x2f6   :  { %1163 = vmatprep.subr.bf16.mxu0 %v1313_v0 }
 0x2f9   :  { %1165 = vmatpush3.bf16.msra.mxu0 %v1393_v11 }
 0x2fa   :  { %1166 = vmatprep.subr.bf16.mxu0 %v1313_v0 }
 0x3c7   :  { %v348_v54 = vpop.f32.mrb[0].mxu0 }
 0x3c8   :  { %v352_v55 = vadd.f32 %v348_v54, %v148_v20  ;;  %v1078_v56 = vpop.f32.mrb[1].mxu0 }
 0x3ca   :  { %1226 = vtanh.f32 %v352_v55  ;;  %v353_v58 = vmul.f32 0.5, %v352_v55 }
 0x3cc   :  { %1228 = vtanh.f32 %v353_v58 }
 0x3d4   :  { %v1227_v57 = vpop.eup %1226 }
 0x3d5   :  { %360 = vrot.lane.b32.xlu0 %v1227_v57, %s1316_s0 }
 0x3d6   :  { %v1229_v59 = vpop.eup %1228 }
 0x3d7   :  { %v355_v60 = vadd.f32 1.0, %v1229_v59 }
 0x3d9   :  { %v356_v61 = vmul.f32 0.5, %v355_v60 }
 0x3db   :  { %v358_v2 = vmul.f32 %v356_v61, %v270_v49 }
 0x447   :  { %v361_v62 = vpop.permute.xlu0 %360 }
 0x448   :  { %v363_v63 = vmul.f32 %v361_v62, %v356_v61 }
 0x44a   :  { %365 = vrot.lane.b32.xlu1 %v363_v63, %s1316_s0 }
 0x4bc   :  { %v366_v3 = vpop.permute.xlu1 %365 }
 0x4bd   :  { %v368_v4 = vadd.f32 %v366_v3, %v358_v2 }
 0x4bf   :  { %1230 = vtanh.f32 %v368_v4 }
 0x4c9   :  { %v1231_v5 = vpop.eup %1230 }
 0x4ca   :  { %371 = vrot.lane.b32.xlu0 %v1231_v5, %s1316_s0 }
 0x53c   :  { %v372_v6 = vpop.permute.xlu0 %371 }
 0x53d   :  { %v374_v8 = vmul.f32 %v372_v6, %v356_v61 }
 0x53f   :  { %376 = vrot.lane.b32.xlu1 %v374_v8, %s1317_s3 }
 0x5b1   :  { %v377_v9 = vpop.permute.xlu1 %376 }
 0x5b2   :  { %1088 = vmatmul.mubr.msk.f32.vlgmr.msra.gmra.mrb[2].mxu0 %vm180_vm2, %v377_v9 }
 0x5b3   :  { %1168 = vmatpush3.bf16.msra.mxu0 %v1378_v7  ;;  %1098 = vmatprep.mubr.msk.f32.mxu0 %vm1314_vm0, %v1315_v1 }
 0x5b4   :  { %1169 = vmatprep.subr.bf16.mxu0 %v1313_v0 }
 0x5b7   :  { %1171 = vmatpush3.bf16.msra.mxu0 %v1393_v11 }
 0x5b8   :  { %1172 = vmatprep.subr.bf16.mxu0 %v1313_v0 }
 0x685   :  { %v446_v10 = vpop.f32.mrb[2].mxu0 }
 0x686   :  { %v450_v12 = vadd.f32 %v446_v10, %v1445_v23  ;;  %v1089_v13 = vpop.f32.mrb[3].mxu0 }
 0x688   :  { %1232 = vtanh.f32 %v450_v12  ;;  %v451_v15 = vmul.f32 0.5, %v450_v12 }
 0x68a   :  { %1234 = vtanh.f32 %v451_v15 }
 0x692   :  { %v1233_v14 = vpop.eup %1232 }
 0x693   :  { %458 = vrot.lane.b32.xlu0 %v1233_v14, %s1316_s0 }
 0x694   :  { %v1235_v16 = vpop.eup %1234 }
 0x695   :  { %v453_v17 = vadd.f32 1.0, %v1235_v16 }
 0x697   :  { %v454_v18 = vmul.f32 0.5, %v453_v17 }
 0x699   :  { %v456_v21 = vmul.f32 %v454_v18, %v368_v4 }
 0x705   :  { %v459_v19 = vpop.permute.xlu0 %458 }
 0x706   :  { %v461_v20 = vmul.f32 %v459_v19, %v454_v18 }
 0x708   :  { %463 = vrot.lane.b32.xlu1 %v461_v20, %s1316_s0 }
 0x77a   :  { %v464_v22 = vpop.permute.xlu1 %463 }
 0x77b   :  { %v466_v24 = vadd.f32 %v464_v22, %v456_v21 }
 0x77d   :  { %1236 = vtanh.f32 %v466_v24 }
 0x787   :  { %v1237_v25 = vpop.eup %1236 }
 0x788   :  { %469 = vrot.lane.b32.xlu0 %v1237_v25, %s1316_s0 }
 0x7fa   :  { %v470_v23 = vpop.permute.xlu0 %469 }
 0x7fb   :  { %v472_v27 = vmul.f32 %v470_v23, %v454_v18 }
 0x7fd   :  { %474 = vrot.lane.b32.xlu1 %v472_v27, %s1317_s3 }
 0x86f   :  { %v475_v28 = vpop.permute.xlu1 %474 }
 0x870   :  { %1099 = vmatmul.mubr.msk.f32.vlgmr.msra.gmra.mrb[4].mxu0 %vm180_vm2, %v475_v28 }
 0x871   :  { %1174 = vmatpush3.bf16.msra.mxu0 %v1378_v7  ;;  %1109 = vmatprep.mubr.msk.f32.mxu0 %vm1314_vm0, %v1315_v1 }
 0x872   :  { %1175 = vmatprep.subr.bf16.mxu0 %v1313_v0 }
 0x875   :  { %1177 = vmatpush3.bf16.msra.mxu0 %v1393_v11 }
 0x876   :  { %1178 = vmatprep.subr.bf16.mxu0 %v1313_v0 }
 0x943   :  { %v544_v30 = vpop.f32.mrb[4].mxu0 }
 0x944   :  { %v548_v31 = vadd.f32 %v544_v30, %v1447_v26  ;;  %v1100_v33 = vpop.f32.mrb[5].mxu0 }
 0x945   :  { %v866_v33 = vld [vmem:[%s1556_s4 + $0x8] sm:$0xff] }
 0x946   :  { %1238 = vtanh.f32 %v548_v31  ;;  %v549_v36 = vmul.f32 0.5, %v548_v31 }
 0x948   :  { %1240 = vtanh.f32 %v549_v36 }
 0x950   :  { %v1239_v34 = vpop.eup %1238 }
 0x951   :  { %556 = vrot.lane.b32.xlu0 %v1239_v34, %s1316_s0  ;;  %v867_v34 = vld [vmem:[%s1556_s4 + $0x10] sm:$0xff] }
 0x952   :  { %v1241_v37 = vpop.eup %1240 }
 0x953   :  { %v551_v38 = vadd.f32 1.0, %v1241_v37  ;;  %v868_v37 = vld [vmem:[%s1556_s4 + $0x18] sm:$0xff] }
 0x955   :  { %v552_v39 = vmul.f32 0.5, %v551_v38  ;;  %v1194_v38 = vpack.c.bf16 %v868_v37, %v867_v34 }
 0x957   :  { %v554_v42 = vmul.f32 %v552_v39, %v466_v24 }
 0x9c3   :  { %v557_v40 = vpop.permute.xlu0 %556 }
 0x9c4   :  { %v559_v41 = vmul.f32 %v557_v40, %v552_v39 }
 0x9c6   :  { %561 = vrot.lane.b32.xlu1 %v559_v41, %s1316_s0 }
 0xa38   :  { %v562_v43 = vpop.permute.xlu1 %561 }
 0xa39   :  { %v564_v44 = vadd.f32 %v562_v43, %v554_v42  ;;  %v981_v43 = vld [vmem:[%s1557_s5] ss:$0 sm:$0xff] }
 0xa3b   :  { %1242 = vtanh.f32 %v564_v44 }
 0xa45   :  { %v1243_v45 = vpop.eup %1242 }
 0xa46   :  { %567 = vrot.lane.b32.xlu0 %v1243_v45, %s1316_s0 }
 0xab8   :  { %v568_v26 = vpop.permute.xlu0 %567 }
 0xab9   :  { %v570_v46 = vmul.f32 %v568_v26, %v552_v39 }
 0xabb   :  { %572 = vrot.lane.b32.xlu1 %v570_v46, %s1317_s3 }
 0xb2d   :  { %v573_v47 = vpop.permute.xlu1 %572 }
 0xb2e   :  { %1110 = vmatmul.mubr.msk.f32.vlgmr.msra.gmra.mrb[6].mxu0 %vm180_vm2, %v573_v47 }
 0xb2f   :  { %1180 = vmatpush3.bf16.msra.mxu0 %v1378_v7  ;;  %1120 = vmatprep.mubr.msk.f32.mxu0 %vm1314_vm0, %v1315_v1 }
 0xb30   :  { %1181 = vmatprep.subr.bf16.mxu0 %v1313_v0 }
 0xb33   :  { %1183 = vmatpush3.bf16.msra.mxu0 %v1393_v11 }
 0xb34   :  { %1184 = vmatprep.subr.bf16.mxu0 %v1313_v0 }
 0xc01   :  { %v642_v48 = vpop.f32.mrb[6].mxu0 }
 0xc02   :  { %v646_v49 = vadd.f32 %v642_v48, %v1449_v29  ;;  %v1111_v50 = vpop.f32.mrb[7].mxu0 }
 0xc04   :  { %1244 = vtanh.f32 %v646_v49  ;;  %v647_v52 = vmul.f32 0.5, %v646_v49 }
 0xc06   :  { %1246 = vtanh.f32 %v647_v52 }
 0xc0e   :  { %v1245_v51 = vpop.eup %1244 }
 0xc0f   :  { %654 = vrot.lane.b32.xlu0 %v1245_v51, %s1316_s0 }
 0xc10   :  { %v1247_v53 = vpop.eup %1246 }
 0xc11   :  { %v649_v54 = vadd.f32 1.0, %v1247_v53 }
 0xc13   :  { %v650_v55 = vmul.f32 0.5, %v649_v54 }
 0xc15   :  { %v652_v58 = vmul.f32 %v650_v55, %v564_v44 }
 0xc81   :  { %v655_v56 = vpop.permute.xlu0 %654 }
 0xc82   :  { %v657_v57 = vmul.f32 %v655_v56, %v650_v55 }
 0xc84   :  { %659 = vrot.lane.b32.xlu1 %v657_v57, %s1316_s0 }
 0xcf6   :  { %v660_v59 = vpop.permute.xlu1 %659 }
 0xcf7   :  { %v662_v60 = vadd.f32 %v660_v59, %v652_v58 }
 0xcf9   :  { %1248 = vtanh.f32 %v662_v60 }
 0xd03   :  { %v1249_v61 = vpop.eup %1248 }
 0xd04   :  { %665 = vrot.lane.b32.xlu0 %v1249_v61, %s1316_s0 }
 0xd76   :  { %v666_v29 = vpop.permute.xlu0 %665 }
 0xd77   :  { %v668_v62 = vmul.f32 %v666_v29, %v650_v55 }
 0xd79   :  { %670 = vrot.lane.b32.xlu1 %v668_v62, %s1317_s3 }
 0xdeb   :  { %v671_v63 = vpop.permute.xlu1 %670 }
 0xdec   :  { %1121 = vmatmul.mubr.msk.f32.vlgmr.msra.gmra.mrb[8].mxu0 %vm180_vm2, %v671_v63 }
 0xded   :  { %1186 = vmatpush3.bf16.msra.mxu0 %v1378_v7  ;;  %1131 = vmatprep.mubr.msk.f32.mxu0 %vm1314_vm0, %v1315_v1 }
 0xdee   :  { %1187 = vmatprep.subr.bf16.mxu0 %v1313_v0 }
 0xdf1   :  { %1189 = vmatpush3.bf16.msra.mxu0 %v1393_v11 }
 0xebf   :  { %v740_v2 = vpop.f32.mrb[8].mxu0 }
 0xec0   :  { %v744_v3 = vadd.f32 %v740_v2, %v1451_v32  ;;  %v1122_v4 = vpop.f32.mrb[9].mxu0 }
 0xec2   :  { %1250 = vtanh.f32 %v744_v3  ;;  %v745_v6 = vmul.f32 0.5, %v744_v3 }
 0xec4   :  { %1252 = vtanh.f32 %v745_v6 }
 0xecc   :  { %v1251_v5 = vpop.eup %1250 }
 0xecd   :  { %752 = vrot.lane.b32.xlu0 %v1251_v5, %s1316_s0 }
 0xece   :  { %v1253_v8 = vpop.eup %1252 }
 0xecf   :  { %v747_v9 = vadd.f32 1.0, %v1253_v8 }
 0xed1   :  { %v748_v7 = vmul.f32 0.5, %v747_v9 }
 0xed3   :  { %v750_v1 = vmul.f32 %v748_v7, %v662_v60 }
 0xf3f   :  { %v753_v10 = vpop.permute.xlu0 %752 }
 0xf40   :  { %v755_v12 = vmul.f32 %v753_v10, %v748_v7 }
 0xf42   :  { %757 = vrot.lane.b32.xlu1 %v755_v12, %s1316_s0 }
 0xfb4   :  { %v758_v13 = vpop.permute.xlu1 %757 }
 0xfb5   :  { %v760_v11 = vadd.f32 %v758_v13, %v750_v1 }
 0xfb7   :  { %1254 = vtanh.f32 %v760_v11 }
 0xfc1   :  { %v1255_v14 = vpop.eup %1254 }
 0xfc2   :  { %763 = vrot.lane.b32.xlu0 %v1255_v14, %s1316_s0 }
0x1034   :  { %v764_v32 = vpop.permute.xlu0 %763 }
0x1035   :  { %v766_v15 = vmul.f32 %v764_v32, %v748_v7 }
0x1037   :  { %768 = vrot.lane.b32.xlu1 %v766_v15, %s1317_s3 }
0x10a9   :  { %v769_v16 = vpop.permute.xlu1 %768 }
0x10aa   :  { %1132 = vmatmul.mubr.msk.f32.vlgmr.msra.gmra.mrb[10].mxu0 %vm180_vm2, %v769_v16 }
0x117d   :  { %v838_v17 = vpop.f32.mrb[10].mxu0 }
0x117e   :  { %v842_v18 = vadd.f32 %v838_v17, %v1453_v35  ;;  %v1133_v19 = vpop.f32.mrb[11].mxu0  ;;  %v865_v35 = vld [vmem:[%s1556_s4] sm:$0xff]  ;;  %s1318_s4 = smov [#allocation5]  }
0x117f   :  { %v1191_v36 = vpack.c.bf16 %v866_v33, %v865_v35  ;;  %s958_s18 = sshll.u32 %s1318_s4, 4  ;;  %s959_s18 = int_to_ptr.vmem [resolvable:$true] %s958_s18 }
0x1180   :  { %1256 = vtanh.f32 %v842_v18  ;;  %v843_v21 = vmul.f32 0.5, %v842_v18  ;;  %s1284_s19 = scalar_lea.vmem %s959_s18, 128  ;;  %p1289_p9 = scmp.lt.s32.totalorder %s959_s18, %s959_s18 }
0x1181   :  { %1192 = vmatpush3.bf16.msra.mxu1 %v1191_v36  ;;  %p1285_p8 = scmp.ne.s32.totalorder %s959_s18, %s1284_s19  ;;  %p1290_p10 = scmp.lt.s32.totalorder %s1284_s19, %s1284_s19 }
0x1182   :  { %1258 = vtanh.f32 %v843_v21  ;;  %1193 = vmatprep.subr.bf16.mxu1 %v1313_v0 }
0x1183   :  { %p1291_p11 = por %p1290_p10, %p1289_p9 }
0x1185   :  { %1195 = vmatpush3.bf16.msra.mxu1 %v1194_v38  ;;  %p1292_p12 = pnand %p1291_p11, %p1285_p8 }
0x118a   :  { %v1257_v20 = vpop.eup %1256 }
0x118b   :  { %850 = vrot.lane.b32.xlu0 %v1257_v20, %s1316_s0 }
0x118c   :  { %v1259_v22 = vpop.eup %1258 }
0x118d   :  { %v845_v24 = vadd.f32 1.0, %v1259_v22 }
0x118f   :  { %v846_v25 = vmul.f32 0.5, %v845_v24 }
0x1191   :  { %v848_v28 = vmul.f32 %v846_v25, %v760_v11 }
0x11fd   :  { %v851_v23 = vpop.permute.xlu0 %850 }
0x11fe   :  { %v853_v27 = vmul.f32 %v851_v23, %v846_v25 }
0x1200   :  { %855 = vrot.lane.b32.xlu1 %v853_v27, %s1316_s0 }
0x1272   :  { %v856_v30 = vpop.permute.xlu1 %855 }
0x1273   :  { %v858_v31 = vadd.f32 %v856_v30, %v848_v28 }
0x1275   :  { %1260 = vtanh.f32 %v858_v31 }
0x127f   :  { %v1261_v39 = vpop.eup %1260 }
0x1280   :  { %861 = vrot.lane.b32.xlu0 %v1261_v39, %s1316_s0 }
0x12f2   :  { %v862_v40 = vpop.permute.xlu0 %861 }
0x12f3   :  { %v864_v41 = vmul.f32 %v862_v40, %v846_v25 }
0x12f5   :  { %877 = vrot.lane.b32.xlu1 %v864_v41, %s1317_s3 }
0x1367   :  { %v878_v42 = vpop.permute.xlu1 %877 }
0x1368   :  { %1143 = vmatmul.mubr.msk.f32.vlgmr.msra.gmra.mrb[14].mxu1 %vm180_vm2, %v878_v42 }
0x143b   :  { %v947_v44 = vpop.f32.mrb[14].mxu1 }
0x143c   :  { %v948_v45 = vadd.f32 %v981_v43, %v947_v44  ;;  %v1144_v0 = vpop.f32.mrb[15].mxu1 }
0x143e   :  { %951 = vst [vmem:[#allocation5] sm:$0xff] %v948_v45 }
0x143f   :  { %1295 = shalt.err (!%p1292_p12)
}
0x1440   :  { %s1296_s2 = scalar_lea.hbm %s1558_s6, 128 }
0x1441   :  { %p1297_p13 = scmp.ne.s32.totalorder %s1558_s6, %s1296_s2  ;;  %p1300_p0 = scmp.lt.u32.totalorder %s1296_s2, %s1558_s6 }
0x1443   :  { %p1302_p1 = pnand %p1300_p0, %p1297_p13 }
0x1445   :  { %1305 = shalt.err (!%p1302_p1)
}
0x1446   :  { %961 = dma.vmem_to_hbm [thread:$0]  %s959_s18, 128, %s1558_s6, [#allocation4]  }
0x1447   :  { %1308 = dma.done.wait [#allocation4], 128  }
0x1448   :  { %1309 = vsyncadd [#allocation4], 4294967168 }
0x1449   :  { %965 = vsyncpa [#allocation3], 1 }
0x144a   :  { %966 = vsyncpa [#allocation4], 1 }

</bundles_post_ra>
